<compile_context>
chip_gen: v5e
topology: v5e:2x2
jax: 0.10.0
libtpu: 0.0.40
codegen_flags: <defaults>
</compile_context>

<pallas_src>
import functools

import jax
import jax.numpy as jnp
import numpy as np
from jax import lax
from jax.experimental import pallas as pl
from jax.experimental.pallas import tpu as pltpu


# ------------------------------ Per-sample compute ----------------------------
def _conv_block(x, w1, b1, w2f, b2, masks, shortcut, W, HW, matmul_dtype):
    """silu(BN(conv1x1(x))) -> silu(BN(conv3x3(.))) [+ x] for one (Cin, HW) sample."""
    # ---- 1x1 conv + folded BN + SiLU (squeezed activation stays in VMEM) ----
    t = jnp.dot(w1, x.astype(matmul_dtype),
                preferred_element_type=jnp.float32) + b1
    t = t * jax.nn.sigmoid(t)                                  # (Csq, HW) f32

    # ---- 3x3 conv (padding=1) as ONE MXU matmul with K = 9*Csq ----
    # Tap (ky, kx) is t shifted by d = (ky-1)*W + (kx-1) along the flat pixel axis
    # (pltpu.roll, XLU slot); out-of-image neighbors masked to zero with the hoisted
    # (1, HW) boundary masks.  All 9 taps are stacked on the contraction axis so the
    # MXU sees a single deep matmul instead of 9 shallow K=Csq ones.
    taps = []
    for ky in range(3):
        for kx in range(3):
            d = (ky - 1) * W + (kx - 1)
            s = t if d == 0 else pltpu.roll(t, shift=(-d) % HW, axis=1)
            m = masks[3 * ky + kx]
            if m is not None:
                s = jnp.where(m, s, 0.0)
            taps.append(s)
    stacked = jnp.concatenate(taps, axis=0).astype(matmul_dtype)   # (9*Csq, HW)

    y = jnp.dot(w2f, stacked, preferred_element_type=jnp.float32) + b2
    y = y * jax.nn.sigmoid(y)
    if shortcut:
        y = y + x                                              # residual in f32
    return y                                                   # (Cout, HW) f32


# ------------------------------ Pallas kernel ---------------------------------
def _yolox_bottleneck_kernel(S, shortcut, H, W, matmul_dtype,
                             x_ref, w1_ref, b1_ref, w2_ref, b2_ref, o_ref):
    HW = H * W

    # Weights/biases loaded once per invocation (constant index_map -> VMEM resident).
    w1 = w1_ref[...]
    b1 = b1_ref[...]
    w2f = w2_ref[...]
    b2 = b2_ref[...]

    # ---- boundary masks: hoisted out of the tap loop, (1, HW), built once ----
    # TODO(synk): for non-power-of-two W (real YOLOX 20/40/80) precompute the 4 base
    # masks on the host and pass them as tiny constant-index_map inputs to avoid %W.
    pix = lax.broadcasted_iota(jnp.int32, (1, HW), 1)          # per-sample pixel id
    col = pix % W
    not_top = pix >= W
    not_bot = pix < HW - W
    not_left = col != 0
    not_right = col != W - 1
    masks = []
    for ky in range(3):
        for kx in range(3):
            m = None
            if ky == 0:
                m = not_top
            elif ky == 2:
                m = not_bot
            if kx == 0:
                m = not_left if m is None else jnp.logical_and(m, not_left)
            elif kx == 2:
                m = not_right if m is None else jnp.logical_and(m, not_right)
            masks.append(m)

    if S == 1:
        # Squeezed leading dim: x_ref is (Cin, HW), o_ref is (Cout, HW); lane-dense store.
        o_ref[...] = _conv_block(x_ref[...], w1, b1, w2f, b2, masks,
                                 shortcut, W, HW, matmul_dtype).astype(o_ref.dtype)
    else:
        # Multiple samples per grid step (single-TC chips): one DMA + one invocation,
        # unrolled per-sample loop; masks/rolls are per-sample so no cross-sample leak.
        for s in range(S):
            o_ref[s] = _conv_block(x_ref[s], w1, b1, w2f, b2, masks,
                                   shortcut, W, HW, matmul_dtype).astype(o_ref.dtype)


# ------------------------------ Host wrapper -----------------------------------
def yolox_bottleneck_forward(x_nchw, params, shortcut=True, *,
                             samples_per_step=1, matmul_dtype=jnp.float32):
    """Fused YOLOXBottleneck forward.  x_nchw: (N, Cin, H, W) float32 (NCHW).

    samples_per_step: samples folded into one grid step.  Keep 1 on v7x (grid=(N,)
      marked "parallel" so both TensorCores get a sample); use N on single-TC
      v5e/v6e to halve the fixed ~0.35us/step overhead.
    matmul_dtype: jnp.bfloat16 on v6e/v7x for native MXU throughput (f32 accumulate,
      bias/SiLU/residual stay f32); jnp.float32 for bit-tight accuracy.
    """
    N, Cin, H, W = x_nchw.shape
    HW = H * W
    # Lane-dense guard: HW must sit cleanly on the 128-lane axis, otherwise every
    # store becomes a masked vst.msk (measured ~4.5x wall-minus-compute penalty).
    assert HW % 128 == 0, f"H*W={HW} must be a multiple of 128 (pad spatial dims)"
    S = int(samples_per_step)
    assert 1 <= S <= N and N % S == 0, "samples_per_step must divide N"

    w1_4d = params["conv1"]["w"]                              # (Csq, Cin, 1, 1) OIHW
    Csq = w1_4d.shape[0]
    w1 = w1_4d.reshape(Csq, Cin).astype(matmul_dtype)
    b1 = params["conv1"]["b"].reshape(Csq, 1)                 # f32

    w2_oihw = params["conv2"]["w"]                            # (Cout, Csq, 3, 3) OIHW
    Cout = w2_oihw.shape[0]
    # w2f[o, (3*ky+kx)*Csq + c] = w2_oihw[o, c, ky, kx]  (matches in-kernel tap stack)
    w2f = jnp.transpose(w2_oihw, (0, 2, 3, 1)).reshape(Cout, 9 * Csq).astype(matmul_dtype)
    b2 = params["conv2"]["b"].reshape(Cout, 1)                # f32

    use_shortcut = bool(shortcut) and (Cin == Cout)

    # Contiguous (free) reshape: spatial flattened onto the lane axis.
    x2 = x_nchw.reshape(N, Cin, HW)

    kernel = functools.partial(_yolox_bottleneck_kernel, S, use_shortcut, H, W,
                               matmul_dtype)

    if S == 1:
        x_block = (pl.Squeezed(), Cin, HW)
        o_block = (pl.Squeezed(), Cout, HW)
    else:
        x_block = (S, Cin, HW)
        o_block = (S, Cout, HW)

    flops = 2 * N * HW * (Csq * Cin + 9 * Cout * Csq) + 6 * N * HW * (Csq + Cout)
    transcendentals = N * HW * (Csq + Cout)                   # one sigmoid per element
    bytes_accessed = 4 * (N * (Cin + Cout) * HW) + \
        int(jnp.dtype(matmul_dtype).itemsize) * (Csq * Cin + 9 * Cout * Csq) + \
        4 * (Csq + Cout)

    out = pl.pallas_call(
        kernel,
        out_shape=jax.ShapeDtypeStruct((N, Cout, HW), jnp.float32),
        grid=(N // S,),
        in_specs=[
            pl.BlockSpec(x_block, lambda n: (n, 0, 0)),       # per-step activation
            pl.BlockSpec((Csq, Cin), lambda n: (0, 0)),       # VMEM-resident weights
            pl.BlockSpec((Csq, 1), lambda n: (0, 0)),
            pl.BlockSpec((Cout, 9 * Csq), lambda n: (0, 0)),
            pl.BlockSpec((Cout, 1), lambda n: (0, 0)),
        ],
        out_specs=pl.BlockSpec(o_block, lambda n: (n, 0, 0)),
        compiler_params=pltpu.CompilerParams(
            dimension_semantics=("parallel",),
            vmem_limit_bytes=32 * 1024 * 1024,
        ),
        cost_estimate=pl.CostEstimate(flops=flops,
                                      transcendentals=transcendentals,
                                      bytes_accessed=bytes_accessed),
    )(x2, w1, b1, w2f, b2)

    # TODO(synk): for production YOLOX sizes whose per-step (C, H*W) slab exceeds
    # v7x's 64 MiB VMEM, add an H*W grid axis with 1-row halo recompute of the
    # squeezed activation (>=512-lane tiles) instead of a whole sample per step.
    return out.reshape(N, Cout, H, W)


# ------------------------------ Parameter init --------------------------------
def _init_conv_bn_folded(key, cout, cin, ksize, eps=1e-5):
    """Conv2d(bias=False) + BatchNorm2d (eval), folded to one OIHW weight + bias."""
    kw, kg, kb, km, kv = jax.random.split(key, 5)
    w = 0.1 * jax.random.normal(kw, (cout, cin, ksize, ksize), jnp.float32)
    gamma = 1.0 + 0.1 * jax.random.normal(kg, (cout,), jnp.float32)
    beta = 0.1 * jax.random.normal(kb, (cout,), jnp.float32)
    mean = 0.1 * jax.random.normal(km, (cout,), jnp.float32)
    var = jnp.abs(jax.random.normal(kv, (cout,), jnp.float32)) + 0.5
    scale = gamma / jnp.sqrt(var + eps)
    return {"w": w * scale[:, None, None, None], "b": beta - mean * scale}


def init_yolox_bottleneck(key, inplanes, planes, reduction=0.5):
    squeezed = max(1, int(planes * reduction))
    k1, k2 = jax.random.split(key)
    return {"conv1": _init_conv_bn_folded(k1, squeezed, inplanes, 1),
            "conv2": _init_conv_bn_folded(k2, planes, squeezed, 3)}


# -------------------------- Pure-JAX reference check --------------------------
def reference_forward(x_nchw, params, shortcut=True):
    def cba(x, p, padding):
        y = lax.conv_general_dilated(
            x, p["w"], (1, 1), padding,
            dimension_numbers=("NCHW", "OIHW", "NCHW"),
            precision=lax.Precision.HIGHEST)
        y = y + p["b"].reshape(1, -1, 1, 1)
        return y * jax.nn.sigmoid(y)

    out = cba(x_nchw, params["conv1"], "VALID")
    out = cba(out, params["conv2"], ((1, 1), (1, 1)))
    if shortcut and x_nchw.shape[1] == out.shape[1]:
        out = out + x_nchw
    return out


# ----------------------------------- Main --------------------------------------
if __name__ == "__main__":
    key = jax.random.PRNGKey(0)
    k_x, k_p = jax.random.split(key)

    # inplanes == planes so the shortcut path is exercised (PyTorch default behavior).
    N, inplanes, planes, H, W = 2, 8, 8, 16, 16
    x = jax.random.normal(k_x, (N, inplanes, H, W), jnp.float32)
    params = init_yolox_bottleneck(k_p, inplanes, planes, reduction=0.5)

    ref = np.asarray(reference_forward(x, params))

    # 1) Default: one sample per grid step, grid=(N,) "parallel" (v7x: both TCs busy).
    out = jax.block_until_ready(jax.jit(yolox_bottleneck_forward)(x, params))
    assert out.shape == (N, planes, H, W)
    np.testing.assert_allclose(np.asarray(out), ref, rtol=2e-4, atol=2e-4)

    # 2) Single-TC (v5e/v6e) variant: fold the whole batch into one grid step.
    fwd_fold = jax.jit(functools.partial(yolox_bottleneck_forward,
                                         samples_per_step=N))
    out_fold = jax.block_until_ready(fwd_fold(x, params))
    np.testing.assert_allclose(np.asarray(out_fold), ref, rtol=2e-4, atol=2e-4)

    # 3) bf16 MXU operands (v6e/v7x): f32 accumulation, looser tolerance.
    fwd_bf16 = jax.jit(functools.partial(yolox_bottleneck_forward,
                                         matmul_dtype=jnp.bfloat16))
    out_bf16 = jax.block_until_ready(fwd_bf16(x, params))
    np.testing.assert_allclose(np.asarray(out_bf16), ref, rtol=5e-2, atol=5e-2)

    print("KERNEL_OK")
</pallas_src>

<mosaic_0001>
module attributes {stable_mosaic.version = 11 : i64} {
  func.func @_yolox_bottleneck_kernel(%arg0: i32, %arg1: memref<1x8x256xf32, #tpu.memory_space<vmem>>, %arg2: memref<4x8xf32, #tpu.memory_space<vmem>>, %arg3: memref<4x1xf32, #tpu.memory_space<vmem>>, %arg4: memref<8x36xf32, #tpu.memory_space<vmem>>, %arg5: memref<8x1xf32, #tpu.memory_space<vmem>>, %arg6: memref<1x8x256xf32, #tpu.memory_space<vmem>>) attributes {dimension_semantics = [#tpu.dimension_semantics<parallel>], iteration_bounds = array<i64: 2>, scalar_prefetch = 0 : i64, scratch_operands = 0 : i64, tpu.core_type = #tpu.core_type<tc>, window_params = [{transform_indices = @transform_0, window_bounds = array<i64: 1, 8, 256>}, {pipeline_mode = #tpu.pipeline_mode<synchronous>, transform_indices = @transform_1, window_bounds = array<i64: 4, 8>}, {pipeline_mode = #tpu.pipeline_mode<synchronous>, transform_indices = @transform_2, window_bounds = array<i64: 4, 1>}, {pipeline_mode = #tpu.pipeline_mode<synchronous>, transform_indices = @transform_3, window_bounds = array<i64: 8, 36>}, {pipeline_mode = #tpu.pipeline_mode<synchronous>, transform_indices = @transform_4, window_bounds = array<i64: 8, 1>}, {transform_indices = @transform_5, window_bounds = array<i64: 1, 8, 256>}]} {
    %c0 = arith.constant 0 : index
    %c0_0 = arith.constant 0 : index
    %0 = vector.load %arg2[%c0, %c0_0] : memref<4x8xf32, #tpu.memory_space<vmem>>, vector<4x8xf32>
    %c0_1 = arith.constant 0 : index
    %c0_2 = arith.constant 0 : index
    %1 = vector.load %arg3[%c0_1, %c0_2] : memref<4x1xf32, #tpu.memory_space<vmem>>, vector<4x1xf32>
    %c0_3 = arith.constant 0 : index
    %c0_4 = arith.constant 0 : index
    %2 = vector.load %arg4[%c0_3, %c0_4] : memref<8x36xf32, #tpu.memory_space<vmem>>, vector<8x36xf32>
    %c0_5 = arith.constant 0 : index
    %c0_6 = arith.constant 0 : index
    %3 = vector.load %arg5[%c0_5, %c0_6] : memref<8x1xf32, #tpu.memory_space<vmem>>, vector<8x1xf32>
    %4 = tpu.iota {dimensions = array<i32: 1>} : vector<1x256xi32>
    %c16_i32 = arith.constant 16 : i32
    %c0_i32 = arith.constant 0 : i32
    %5 = arith.cmpi eq, %c16_i32, %c0_i32 : i32
    %c1_i32 = arith.constant 1 : i32
    %6 = arith.select %5, %c1_i32, %c16_i32 : i32
    %7 = vector.broadcast %6 : i32 to vector<1x256xi32>
    %8 = arith.remsi %4, %7 : vector<1x256xi32>
    %c0_i32_7 = arith.constant 0 : i32
    %9 = vector.broadcast %c0_i32_7 : i32 to vector<1x256xi32>
    %10 = arith.cmpi ne, %8, %9 : vector<1x256xi32>
    %c0_i32_8 = arith.constant 0 : i32
    %11 = vector.broadcast %c0_i32_8 : i32 to vector<1x256xi32>
    %12 = arith.cmpi slt, %8, %11 : vector<1x256xi32>
    %c0_i32_9 = arith.constant 0 : i32
    %13 = arith.cmpi slt, %6, %c0_i32_9 : i32
    %14 = vector.broadcast %13 : i1 to vector<1x256xi1>
    %15 = vector.broadcast %14 : vector<1x256xi1> to vector<1x256xi1>
    %16 = arith.xori %12, %15 : vector<1x256xi1>
    %17 = arith.andi %16, %10 : vector<1x256xi1>
    %18 = vector.broadcast %6 : i32 to vector<1x256xi32>
    %19 = arith.addi %8, %18 : vector<1x256xi32>
    %20 = arith.select %17, %19, %8 : vector<1x256xi1>, vector<1x256xi32>
    %c16_i32_10 = arith.constant 16 : i32
    %21 = vector.broadcast %c16_i32_10 : i32 to vector<1x256xi32>
    %22 = arith.cmpi sge, %4, %21 : vector<1x256xi32>
    %c240_i32 = arith.constant 240 : i32
    %23 = vector.broadcast %c240_i32 : i32 to vector<1x256xi32>
    %24 = arith.cmpi slt, %4, %23 : vector<1x256xi32>
    %c0_i32_11 = arith.constant 0 : i32
    %25 = vector.broadcast %c0_i32_11 : i32 to vector<1x256xi32>
    %26 = arith.cmpi ne, %20, %25 : vector<1x256xi32>
    %c15_i32 = arith.constant 15 : i32
    %27 = vector.broadcast %c15_i32 : i32 to vector<1x256xi32>
    %28 = arith.cmpi ne, %20, %27 : vector<1x256xi32>
    %29 = arith.andi %22, %26 : vector<1x256xi1>
    %30 = arith.andi %22, %28 : vector<1x256xi1>
    %31 = arith.andi %24, %26 : vector<1x256xi1>
    %32 = arith.andi %24, %28 : vector<1x256xi1>
    %c0_12 = arith.constant 0 : index
    %c0_13 = arith.constant 0 : index
    %c0_14 = arith.constant 0 : index
    %33 = vector.load %arg1[%c0_12, %c0_13, %c0_14] : memref<1x8x256xf32, #tpu.memory_space<vmem>>, vector<1x8x256xf32>
    %34 = vector.shape_cast %33 : vector<1x8x256xf32> to vector<8x256xf32>
    %cst = arith.constant dense<0.000000e+00> : vector<4x256xf32>
    %35 = tpu.matmul %0, %34, %cst {dimension_numbers = #tpu.dot_dimension_numbers<[1], [0], [0], [1], [0, 0, 1, 1], [], []>} : vector<4x8xf32>, vector<8x256xf32>, vector<4x256xf32> -> vector<4x256xf32>
    %36 = vector.broadcast %1 : vector<4x1xf32> to vector<4x256xf32>
    %37 = arith.addf %35, %36 : vector<4x256xf32>
    %38 = arith.negf %37 : vector<4x256xf32>
    %39 = math.exp %38 : vector<4x256xf32>
    %cst_15 = arith.constant 1.000000e+00 : f32
    %40 = vector.broadcast %cst_15 : f32 to vector<4x256xf32>
    %41 = arith.addf %40, %39 : vector<4x256xf32>
    %42 = arith.divf %40, %41 : vector<4x256xf32>
    %43 = arith.mulf %37, %42 : vector<4x256xf32>
    %c17_i32 = arith.constant 17 : i32
    %44 = tpu.dynamic_rotate %43 by %c17_i32 dim 1 : vector<4x256xf32>, i32 -> vector<4x256xf32>
    %cst_16 = arith.constant 0.000000e+00 : f32
    %45 = vector.shape_cast %29 : vector<1x256xi1> to vector<1x256xi1>
    %46 = vector.broadcast %45 : vector<1x256xi1> to vector<4x256xi1>
    %47 = vector.broadcast %cst_16 : f32 to vector<4x256xf32>
    %48 = arith.select %46, %44, %47 : vector<4x256xi1>, vector<4x256xf32>
    %c16_i32_17 = arith.constant 16 : i32
    %49 = tpu.dynamic_rotate %43 by %c16_i32_17 dim 1 : vector<4x256xf32>, i32 -> vector<4x256xf32>
    %cst_18 = arith.constant 0.000000e+00 : f32
    %50 = vector.shape_cast %22 : vector<1x256xi1> to vector<1x256xi1>
    %51 = vector.broadcast %50 : vector<1x256xi1> to vector<4x256xi1>
    %52 = vector.broadcast %cst_18 : f32 to vector<4x256xf32>
    %53 = arith.select %51, %49, %52 : vector<4x256xi1>, vector<4x256xf32>
    %c15_i32_19 = arith.constant 15 : i32
    %54 = tpu.dynamic_rotate %43 by %c15_i32_19 dim 1 : vector<4x256xf32>, i32 -> vector<4x256xf32>
    %cst_20 = arith.constant 0.000000e+00 : f32
    %55 = vector.shape_cast %30 : vector<1x256xi1> to vector<1x256xi1>
    %56 = vector.broadcast %55 : vector<1x256xi1> to vector<4x256xi1>
    %57 = vector.broadcast %cst_20 : f32 to vector<4x256xf32>
    %58 = arith.select %56, %54, %57 : vector<4x256xi1>, vector<4x256xf32>
    %c1_i32_21 = arith.constant 1 : i32
    %59 = tpu.dynamic_rotate %43 by %c1_i32_21 dim 1 : vector<4x256xf32>, i32 -> vector<4x256xf32>
    %cst_22 = arith.constant 0.000000e+00 : f32
    %60 = vector.shape_cast %26 : vector<1x256xi1> to vector<1x256xi1>
    %61 = vector.broadcast %60 : vector<1x256xi1> to vector<4x256xi1>
    %62 = vector.broadcast %cst_22 : f32 to vector<4x256xf32>
    %63 = arith.select %61, %59, %62 : vector<4x256xi1>, vector<4x256xf32>
    %c255_i32 = arith.constant 255 : i32
    %64 = tpu.dynamic_rotate %43 by %c255_i32 dim 1 : vector<4x256xf32>, i32 -> vector<4x256xf32>
    %cst_23 = arith.constant 0.000000e+00 : f32
    %65 = vector.shape_cast %28 : vector<1x256xi1> to vector<1x256xi1>
    %66 = vector.broadcast %65 : vector<1x256xi1> to vector<4x256xi1>
    %67 = vector.broadcast %cst_23 : f32 to vector<4x256xf32>
    %68 = arith.select %66, %64, %67 : vector<4x256xi1>, vector<4x256xf32>
    %c241_i32 = arith.constant 241 : i32
    %69 = tpu.dynamic_rotate %43 by %c241_i32 dim 1 : vector<4x256xf32>, i32 -> vector<4x256xf32>
    %cst_24 = arith.constant 0.000000e+00 : f32
    %70 = vector.shape_cast %31 : vector<1x256xi1> to vector<1x256xi1>
    %71 = vector.broadcast %70 : vector<1x256xi1> to vector<4x256xi1>
    %72 = vector.broadcast %cst_24 : f32 to vector<4x256xf32>
    %73 = arith.select %71, %69, %72 : vector<4x256xi1>, vector<4x256xf32>
    %c240_i32_25 = arith.constant 240 : i32
    %74 = tpu.dynamic_rotate %43 by %c240_i32_25 dim 1 : vector<4x256xf32>, i32 -> vector<4x256xf32>
    %cst_26 = arith.constant 0.000000e+00 : f32
    %75 = vector.shape_cast %24 : vector<1x256xi1> to vector<1x256xi1>
    %76 = vector.broadcast %75 : vector<1x256xi1> to vector<4x256xi1>
    %77 = vector.broadcast %cst_26 : f32 to vector<4x256xf32>
    %78 = arith.select %76, %74, %77 : vector<4x256xi1>, vector<4x256xf32>
    %c239_i32 = arith.constant 239 : i32
    %79 = tpu.dynamic_rotate %43 by %c239_i32 dim 1 : vector<4x256xf32>, i32 -> vector<4x256xf32>
    %cst_27 = arith.constant 0.000000e+00 : f32
    %80 = vector.shape_cast %32 : vector<1x256xi1> to vector<1x256xi1>
    %81 = vector.broadcast %80 : vector<1x256xi1> to vector<4x256xi1>
    %82 = vector.broadcast %cst_27 : f32 to vector<4x256xf32>
    %83 = arith.select %81, %79, %82 : vector<4x256xi1>, vector<4x256xf32>
    %84 = tpu.concatenate %48, %53, %58, %63, %43, %68, %73, %78, %83 in 0 : vector<4x256xf32>, vector<4x256xf32>, vector<4x256xf32>, vector<4x256xf32>, vector<4x256xf32>, vector<4x256xf32>, vector<4x256xf32>, vector<4x256xf32>, vector<4x256xf32> -> vector<36x256xf32>
    %cst_28 = arith.constant dense<0.000000e+00> : vector<8x256xf32>
    %85 = tpu.matmul %2, %84, %cst_28 {dimension_numbers = #tpu.dot_dimension_numbers<[1], [0], [0], [1], [0, 0, 1, 1], [], []>} : vector<8x36xf32>, vector<36x256xf32>, vector<8x256xf32> -> vector<8x256xf32>
    %86 = vector.broadcast %3 : vector<8x1xf32> to vector<8x256xf32>
    %87 = arith.addf %85, %86 : vector<8x256xf32>
    %88 = arith.negf %87 : vector<8x256xf32>
    %89 = math.exp %88 : vector<8x256xf32>
    %cst_29 = arith.constant 1.000000e+00 : f32
    %90 = vector.broadcast %cst_29 : f32 to vector<8x256xf32>
    %91 = arith.addf %90, %89 : vector<8x256xf32>
    %92 = arith.divf %90, %91 : vector<8x256xf32>
    %93 = arith.mulf %87, %92 : vector<8x256xf32>
    %94 = arith.addf %93, %34 : vector<8x256xf32>
    %c0_30 = arith.constant 0 : index
    %c0_31 = arith.constant 0 : index
    %c0_32 = arith.constant 0 : index
    %95 = vector.load %arg6[%c0_30, %c0_31, %c0_32] : memref<1x8x256xf32, #tpu.memory_space<vmem>>, vector<1x8x256xf32>
    %96 = vector.shape_cast %95 : vector<1x8x256xf32> to vector<8x256xf32>
    %97 = vector.shape_cast %94 : vector<8x256xf32> to vector<1x8x256xf32>
    tpu.vector_store %arg6[%c0_30, %c0_31, %c0_32], %97 {strides = array<i32>} : memref<1x8x256xf32, #tpu.memory_space<vmem>>, vector<1x8x256xf32>,
    return
  }
  func.func @transform_0(%arg0: i32) -> (i32, i32, i32) {
    %c0_i32 = arith.constant 0 : i32
    %c0_i32_0 = arith.constant 0 : i32
    %c0_i32_1 = arith.constant 0 : i32
    return %arg0, %c0_i32, %c0_i32_0 : i32, i32, i32
  }
  func.func @transform_1(%arg0: i32) -> (i32, i32) {
    %c0_i32 = arith.constant 0 : i32
    %c0_i32_0 = arith.constant 0 : i32
    %c0_i32_1 = arith.constant 0 : i32
    return %c0_i32, %c0_i32_0 : i32, i32
  }
  func.func @transform_2(%arg0: i32) -> (i32, i32) {
    %c0_i32 = arith.constant 0 : i32
    %c0_i32_0 = arith.constant 0 : i32
    %c0_i32_1 = arith.constant 0 : i32
    return %c0_i32, %c0_i32_0 : i32, i32
  }
  func.func @transform_3(%arg0: i32) -> (i32, i32) {
    %c0_i32 = arith.constant 0 : i32
    %c0_i32_0 = arith.constant 0 : i32
    %c0_i32_1 = arith.constant 0 : i32
    return %c0_i32, %c0_i32_0 : i32, i32
  }
  func.func @transform_4(%arg0: i32) -> (i32, i32) {
    %c0_i32 = arith.constant 0 : i32
    %c0_i32_0 = arith.constant 0 : i32
    %c0_i32_1 = arith.constant 0 : i32
    return %c0_i32, %c0_i32_0 : i32, i32
  }
  func.func @transform_5(%arg0: i32) -> (i32, i32, i32) {
    %c0_i32 = arith.constant 0 : i32
    %c0_i32_0 = arith.constant 0 : i32
    %c0_i32_1 = arith.constant 0 : i32
    return %arg0, %c0_i32, %c0_i32_0 : i32, i32, i32
  }
}

</mosaic_0001>

<bundles_post_ra>
// kernel: yolox_bottleneck_forward.1
= control target key start
LH: loop header
LB: loop body
LE: loop exit
PB: predicated region body
PF: predicated region fallthrough
CT: control target
= control target key end

     0   :  { %s794_s18 = smov 0   ;;  %s946_s0 = inlined_call_operand.vmem [shape: f32[2,8,256], index: 0, kind: input, shape index: {}]   ;;  %s947_s1 = inlined_call_operand.vmem [shape: f32[4,8], index: 1, kind: input, shape index: {}]   ;;  %s948_s2 = inlined_call_operand.vmem [shape: f32[4,1], index: 2, kind: input, shape index: {}]   ;;  %s949_s3 = inlined_call_operand.vmem [shape: f32[8,36], index: 3, kind: input, shape index: {}]   ;;  %s950_s4 = inlined_call_operand.vmem [shape: f32[8,1], index: 4, kind: input, shape index: {}]   ;;  %s951_s5 = inlined_call_operand.vmem [shape: f32[2,8,256], index: 5, kind: output, shape index: {}]  }
   0x1 LB: > { %s654_s19 = sadd.s32 4294967295, %s753_s18   ;;  %p658_p0 = scmp.ge.s32.totalorder %s753_s18, 1  ;;  %s753_s18 = sphi %s794_s18, %s15_s18  }
   0x2   : > { %p187_p1 = scmp.lt.s32.totalorder %s753_s18, 3 }
   0x4   : > { %p188_p2 = pnand %p658_p0, %p187_p1 }
   0x5   : > { %p215_p3 = scmp.lt.s32.totalorder (!%p188_p2), %s654_s19, 1  ;;  %s756_s28 = smov (!%p188_p2), 111  }
   0x6   : > { %191 = sbr.rel (%p188_p2) target bundleno = 482 (0x1e2), region = 40  ;;  %s757_s29 = smov (!%p188_p2), 127  }
   0x7   : > { %s758_s30 = smov (!%p188_p2), 112   ;;  %s759_s6 = smov (!%p188_p2), 113  }
   0x8   : > { %s760_s7 = smov (!%p188_p2), 1   ;;  %s761_s8 = smov (!%p188_p2), 16  }
   0x9   : > { %s762_s9 = smov (!%p188_p2), 15   ;;  %s763_s10 = smov (!%p188_p2), 17  }
   0xb   : > { %v755_v0 = vmov 0   ;;  %v226_v1 = vld [vmem:[%s948_s2] sm:$0xf]  ;;  %s967_s19 = smov (!%p215_p3, %s654_s19), 1  ;;  %vm279_vm0 = vcmask 64512   ;;  %v229_v40 = vlaneseq }
   0xc   : > { %694 = vset.pattern.permute.xlu0 %v755_v0  ;;  %730 = vset.pattern.permute.xlu1 %v755_v0  ;;  %s675_s22 = sshll.u32 %s967_s19, 4  ;;  %v225_v2 = vld [vmem:[%s947_s1] sm:$0xf] }
   0xd   : > { %276 = vperm.xlu0 %694, %v226_v1   ;;  %s219_s25 = scalar_lea.vmem %s946_s0, %s675_s22  ;;  %v830_v41 = vand.u32 127, %v229_v40  ;;  %v228_v42 = vld [vmem:[%s950_s4] sm:$0xff]  ;;  %s224_s17 = scalar_lea.vmem %s951_s5, %s675_s22 }
   0xe   : > { %v816_v3 = vld [vmem:[%s219_s25] sm:$0xff]  ;;  %v818_v4 = vld [vmem:[%s219_s25 + $0x8] sm:$0xff] }
   0xf   : > { %298 = vmatpush.msra.mxu0 %v816_v3  ;;  %318 = vmatpush.msra.mxu1 %v818_v4  ;;  %v231_v43 = vadd.s32 128, %v830_v41  ;;  %v236_v45 = vand.u32 15, %v830_v41  ;;  %vm419_vm9 = vcmp.lt.s32.totalorder %v830_v41, 127  ;;  %vm445_vm12 = vcmp.lt.s32.totalorder %v830_v41, 112 }
  0x10   : > { %663 = vmatmul.msk.f32.vlgmr.msra.gmra.mxu0 %vm279_vm0, %v225_v2  ;;  %664 = vmatmul.msk.f32.vlgmr.msra.gmra.mxu1 %vm279_vm0, %v225_v2  ;;  %vm458_vm13 = vcmp.lt.s32.totalorder %v830_v41, 111  ;;  %vm432_vm15 = vcmp.lt.s32.totalorder %v830_v41, 113 }
  0x11   : > { %v243_v48 = vand.u32 15, %v231_v43  ;;  %vm838_vm10 = vcmp.ne.s32.totalorder %v236_v45, 15  ;;  %vm259_vm14 = vcmp.lt.s32.totalorder %v231_v43, 240 }
  0x13   : > { %vm842_vm11 = vcmp.ne.s32.totalorder %v243_v48, 15  ;;  %vm849_vm0 = vcmp.ne.s32.totalorder %v243_v48, 0 }
  0x7f   : > { %v277_v5 = vpop.permute.xlu0 %276 }
  0x8d   : > { %v300_v6 = vpop.f32.mrf.mxu0  ;;  %v320_v7 = vpop.f32.mrf.mxu1 }
  0x8e   : > { %v301_v8 = vadd.f32 %v300_v6, %v277_v5  ;;  %v321_v9 = vadd.f32 %v320_v7, %v277_v5 }
  0x90   : > { %v665_v10 = vmul.f32 -1.442695, %v301_v8  ;;  %v666_v11 = vmul.f32 -1.442695, %v321_v9 }
  0x92   : > { %731 = vpow2.f32 %v665_v10 }
  0x93   : > { %733 = vpow2.f32 %v666_v11 }
  0x98   : > { %v732_v12 = vpop.eup %731 }
  0x99   : > { %v734_v13 = vpop.eup %733  ;;  %v329_v14 = vadd.f32 1.0, %v732_v12 }
  0x9a   : > { %v330_v15 = vadd.f32 1.0, %v734_v13 }
  0x9b   : > { %735 = vrcp.f32 %v329_v14  ;;  %v342_v21 = vand.u32 2147483648, %v329_v14  ;;  %v340_v24 = vand.u32 2147483647, %v329_v14  ;;  %vm336_vm3 = vweird.f32 %v329_v14 }
  0x9c   : > { %737 = vrcp.f32 %v330_v15  ;;  %v357_v25 = vand.u32 2147483648, %v330_v15  ;;  %v355_v27 = vand.u32 2147483647, %v330_v15  ;;  %vm351_vm5 = vweird.f32 %v330_v15 }
  0x9d   : > { %v343_v29 = vor.u32 1.1754944e-38, %v342_v21  ;;  %vm341_vm6 = vcmp.eq.f32.partialorder %v340_v24, 8.507059e+37 }
  0x9e   : > { %v358_v32 = vor.u32 1.1754944e-38, %v357_v25  ;;  %vm356_vm8 = vcmp.eq.f32.partialorder %v355_v27, 8.507059e+37 }
  0xa1   : > { %v736_v16 = vpop.eup %735 }
  0xa2   : > { %v738_v17 = vpop.eup %737  ;;  %v332_v18 = vmul.f32 %v736_v16, %v329_v14  ;;  %vm337_vm1 = vweird.f32 %v736_v16 }
  0xa3   : > { %v347_v19 = vmul.f32 %v738_v17, %v330_v15  ;;  %vm352_vm2 = vweird.f32 %v738_v17  ;;  %vm338_vm4 = vmor %vm336_vm3, %vm337_vm1  ;;  %vm491_vm1 = vcmask 1043456   ;;  %vm864_vm3 = vcmp.ne.s32.totalorder %v236_v45, 0 }
  0xa4   : > { %v333_v20 = vsub.f32 1.0, %v332_v18  ;;  %vm353_vm7 = vmor %vm351_vm5, %vm352_vm2 }
  0xa5   : > { %v348_v22 = vsub.f32 1.0, %v347_v19  ;;  %vm860_vm2 = vmand %vm259_vm14, %vm842_vm11 }
  0xa6   : > { %v334_v23 = vmul.f32 %v736_v16, %v333_v20  ;;  %vm875_vm5 = vmand %vm259_vm14, %vm849_vm0 }
  0xa7   : > { %v349_v26 = vmul.f32 %v738_v17, %v348_v22 }
  0xa8   : > { %v335_v28 = vadd.f32 %v736_v16, %v334_v23 }
  0xa9   : > { %v350_v30 = vadd.f32 %v738_v17, %v349_v26 }
  0xaa   : > { %v339_v31 = vsel %vm338_vm4, %v736_v16, %v335_v28  ;;  %vm256_vm4 = vcmp.ge.s32.totalorder %v830_v41, 16 }
  0xab   : > { %v344_v33 = vsel %vm341_vm6, %v343_v29, %v339_v31  ;;  %v354_v34 = vsel %vm353_vm7, %v738_v17, %v350_v30  ;;  %vm393_vm6 = vcmp.lt.s32.totalorder %v830_v41, 15  ;;  %vm406_vm7 = vcmp.lt.s32.totalorder %v830_v41, 1 }
  0xac   : > { %v822_v35 = vmul.f32 %v344_v33, %v301_v8  ;;  %v359_v36 = vsel %vm356_vm8, %v358_v32, %v354_v34  ;;  %vm907_vm8 = vmand %vm256_vm4, %vm838_vm10 }
  0xad   : > { %v824_v37 = vmul.f32 %v359_v36, %v321_v9 }
  0xae   : > { %454 = vrot.lane.b32.xlu1 %v822_v35, %s756_s28 }
  0xaf   : > { %v700_v38 = vpack.i.bf16 %v824_v37, %v822_v35 }
  0xb1   : > { %701 = vrot.lane.b32.xlu2 %v700_v38, %s757_s29  ;;  %696 = vrot.lane.b32.xlu0 %v700_v38, %s758_s30 }
  0xb6   : > { %456 = vrot.lane.b32.xlu1 %v824_v37, %s756_s28 }
  0xb9   : > { %706 = vrot.lane.b32.xlu2 %v700_v38, %s759_s6  ;;  %711 = vrot.lane.b32.xlu0 %v700_v38, %s760_s7 }
  0xbe   : > { %716 = vrot.lane.b32.xlu1 %v700_v38, %s761_s8 }
  0xc1   : > { %721 = vrot.lane.b32.xlu2 %v700_v38, %s762_s9  ;;  %726 = vrot.lane.b32.xlu0 %v700_v38, %s763_s10 }
  0xc6   : > { %502 = vperm.xlu1 %730, %v228_v42  }
 0x10b   : > { %v702_v39 = vpop.permute.xlu2 %701 }
 0x10c   : > { %v704_v46 = vunpack.i.h.bf16 %v702_v39  ;;  %v703_v47 = vunpack.i.l.bf16 %v702_v39 }
 0x10e   : > { %v420_v52 = vsel %vm419_vm9, %v703_v47, %v704_v46  ;;  %v421_v54 = vsel %vm419_vm9, %v704_v46, %v703_v47  ;;  %vm380_vm9 = vcmp.lt.s32.totalorder %v830_v41, 16 }
 0x10f   : > { %v426_v60 = vsel %vm838_vm10, %v420_v52, 0.0  ;;  %v427_v63 = vsel %vm842_vm11, %v421_v54, 0.0 }
 0x110   : > { %v481_v14 = vrot.slane %v426_v60, 4  ;;  %v482_v15 = vrot.slane %v427_v63, 4 }
 0x112   : > { %v496_v27 = vsel %vm491_vm1, %v822_v35, %v481_v14  ;;  %v497_v28 = vsel %vm491_vm1, %v824_v37, %v482_v15 }
 0x113   : > { %v707_v44 = vpop.permute.xlu2 %706 }
 0x114   : > { %v709_v55 = vunpack.i.h.bf16 %v707_v44  ;;  %v708_v56 = vunpack.i.l.bf16 %v707_v44 }
 0x116   : > { %v433_v7 = vsel %vm432_vm15, %v708_v56, %v709_v55  ;;  %v434_v10 = vsel %vm432_vm15, %v709_v55, %v708_v56 }
 0x117   : > { %v439_v21 = vsel %vm864_vm3, %v433_v7, 0.0  ;;  %v440_v22 = vsel %vm875_vm5, %v434_v10, 0.0 }
 0x11b   : > { %v722_v0 = vpop.permute.xlu2 %721 }
 0x11c   : > { %v724_v16 = vunpack.i.h.bf16 %v722_v0  ;;  %v723_v17 = vunpack.i.l.bf16 %v722_v0 }
 0x11e   : > { %v395_v30 = vsel %vm393_vm6, %v724_v16, %v723_v17  ;;  %v394_v32 = vsel %vm393_vm6, %v723_v17, %v724_v16 }
 0x11f   : > { %v400_v42 = vsel %vm907_vm8, %v395_v30, 0.0  ;;  %v401_v43 = vsel %vm842_vm11, %v394_v32, 0.0  ;;  %vm505_vm11 = vcmask 293888  }
 0x120   : > { %v455_v49 = vpop.permute.xlu1 %454 }
 0x123   : > { %v697_v51 = vpop.permute.xlu0 %696 }
 0x124   : > { %v699_v57 = vunpack.i.h.bf16 %v697_v51  ;;  %v698_v58 = vunpack.i.l.bf16 %v697_v51 }
 0x126   : > { %v446_v61 = vsel %vm445_vm12, %v698_v58, %v699_v57  ;;  %v447_v62 = vsel %vm445_vm12, %v699_v57, %v698_v58  ;;  %vm264_vm12 = vmand %vm256_vm4, %vm864_vm3  ;;  %v227_v58 = vld [vmem:[%s949_s3] sm:$0xff] }
 0x127   : > { %v453_v5 = vsel %vm259_vm14, %v447_v62, 0.0  ;;  %v487_v8 = vrot.slane %v446_v61, 4 }
 0x128   : > { %v457_v6 = vpop.permute.xlu1 %456  ;;  %v488_v11 = vrot.slane %v453_v5, 4 }
 0x129   : > { %v459_v12 = vsel %vm458_vm13, %v455_v49, %v457_v6  ;;  %v460_v13 = vsel %vm458_vm13, %v457_v6, %v455_v49  ;;  %v498_v25 = vsel %vm491_vm1, %v439_v21, %v487_v8 }
 0x12a   : > { %v465_v18 = vsel %vm838_vm10, %v459_v12, 0.0  ;;  %v466_v19 = vsel %vm860_vm2, %v460_v13, 0.0  ;;  %v499_v26 = vsel %vm491_vm1, %v440_v22, %v488_v11  ;;  %vm367_vm10 = vcmp.lt.s32.totalorder %v830_v41, 17 }
 0x12b   : > { %v712_v20 = vpop.permute.xlu0 %711  ;;  %667 = vmatpush.msk.msra.mxu2 %vm491_vm1, %v465_v18  ;;  %669 = vmatpush.msk.msra.mxu3 %vm491_vm1, %v466_v19 }
 0x12c   : > { %v714_v23 = vunpack.i.h.bf16 %v712_v20  ;;  %v713_v24 = vunpack.i.l.bf16 %v712_v20 }
 0x12d   : > { %527 = vmatpush.msra.mxu2 %v498_v25  ;;  %547 = vmatpush.msra.mxu3 %v499_v26 }
 0x12e   : > { %v408_v31 = vsel %vm406_vm7, %v714_v23, %v713_v24  ;;  %v407_v33 = vsel %vm406_vm7, %v713_v24, %v714_v23 }
 0x12f   : > { %528 = vmatpush.msra.mxu2 %v496_v27  ;;  %548 = vmatpush.msra.mxu3 %v497_v28  ;;  %v413_v34 = vsel %vm864_vm3, %v408_v31, 0.0  ;;  %v414_v35 = vsel %vm849_vm0, %v407_v33, 0.0 }
 0x130   : > { %v717_v36 = vpop.permute.xlu1 %716  ;;  %v475_v37 = vrot.slane %v413_v34, 4  ;;  %v476_v38 = vrot.slane %v414_v35, 4 }
 0x131   : > { %v719_v39 = vunpack.i.h.bf16 %v717_v36  ;;  %v718_v40 = vunpack.i.l.bf16 %v717_v36 }
 0x132   : > { %v494_v44 = vsel %vm491_vm1, %v400_v42, %v475_v37  ;;  %v495_v45 = vsel %vm491_vm1, %v401_v43, %v476_v38 }
 0x133   : > { %v727_v46 = vpop.permute.xlu0 %726  ;;  %529 = vmatpush.msra.mxu2 %v494_v44  ;;  %549 = vmatpush.msra.mxu3 %v495_v45  ;;  %v382_v47 = vsel %vm380_vm9, %v719_v39, %v718_v40  ;;  %v381_v48 = vsel %vm380_vm9, %v718_v40, %v719_v39 }
 0x134   : > { %v729_v49 = vunpack.i.h.bf16 %v727_v46  ;;  %v728_v50 = vunpack.i.l.bf16 %v727_v46  ;;  %v387_v51 = vsel %vm256_vm4, %v382_v47, 0.0  ;;  %v470_v52 = vrot.slane %v381_v48, 4 }
 0x135   : > { %v469_v53 = vrot.slane %v387_v51, 4 }
 0x136   : > { %v369_v54 = vsel %vm367_vm10, %v729_v49, %v728_v50  ;;  %v368_v55 = vsel %vm367_vm10, %v728_v50, %v729_v49 }
 0x137   : > { %v374_v56 = vsel %vm264_vm12, %v369_v54, 0.0  ;;  %v375_v57 = vsel %vm849_vm0, %v368_v55, 0.0 }
 0x138   : > { %v492_v60 = vsel %vm491_vm1, %v374_v56, %v469_v53  ;;  %v493_v61 = vsel %vm491_vm1, %v375_v57, %v470_v52  ;;  %v503_v41 = vpop.permute.xlu1 %502 }
 0x139   : > { %530 = vmatpush.msra.mxu2 %v492_v60  ;;  %550 = vmatpush.msra.mxu3 %v493_v61 }
 0x13a   : > { %668 = vmatmul.msk.f32.vlgmr.msra.gmra.mxu2 %vm505_vm11, %v227_v58  ;;  %670 = vmatmul.msk.f32.vlgmr.msra.gmra.mxu3 %vm505_vm11, %v227_v58 }
 0x1bd   : > { %v532_v62 = vpop.f32.mrf.mxu2  ;;  %v552_v63 = vpop.f32.mrf.mxu3 }
 0x1be   : > { %v533_v0 = vadd.f32 %v532_v62, %v503_v41  ;;  %v553_v1 = vadd.f32 %v552_v63, %v503_v41 }
 0x1c0   : > { %v671_v59 = vmul.f32 -1.442695, %v533_v0  ;;  %v672_v2 = vmul.f32 -1.442695, %v553_v1 }
 0x1c2   : > { %739 = vpow2.f32 %v671_v59 }
 0x1c3   : > { %741 = vpow2.f32 %v672_v2 }
 0x1c8   : > { %v740_v5 = vpop.eup %739 }
 0x1c9   : > { %v742_v6 = vpop.eup %741  ;;  %v561_v7 = vadd.f32 1.0, %v740_v5 }
 0x1ca   : > { %v562_v8 = vadd.f32 1.0, %v742_v6 }
 0x1cb   : > { %743 = vrcp.f32 %v561_v7  ;;  %v574_v14 = vand.u32 2147483648, %v561_v7  ;;  %v572_v17 = vand.u32 2147483647, %v561_v7  ;;  %vm568_vm15 = vweird.f32 %v561_v7 }
 0x1cc   : > { %745 = vrcp.f32 %v562_v8  ;;  %v589_v18 = vand.u32 2147483648, %v562_v8  ;;  %v587_v20 = vand.u32 2147483647, %v562_v8  ;;  %vm583_vm1 = vweird.f32 %v562_v8 }
 0x1cd   : > { %v575_v22 = vor.u32 1.1754944e-38, %v574_v14  ;;  %vm573_vm2 = vcmp.eq.f32.partialorder %v572_v17, 8.507059e+37 }
 0x1ce   : > { %v590_v25 = vor.u32 1.1754944e-38, %v589_v18  ;;  %vm588_vm4 = vcmp.eq.f32.partialorder %v587_v20, 8.507059e+37 }
 0x1d1   : > { %v744_v9 = vpop.eup %743 }
 0x1d2   : > { %v746_v10 = vpop.eup %745  ;;  %v564_v11 = vmul.f32 %v744_v9, %v561_v7  ;;  %vm569_vm13 = vweird.f32 %v744_v9 }
 0x1d3   : > { %v579_v12 = vmul.f32 %v746_v10, %v562_v8  ;;  %vm584_vm14 = vweird.f32 %v746_v10  ;;  %vm570_vm0 = vmor %vm568_vm15, %vm569_vm13 }
 0x1d4   : > { %v565_v13 = vsub.f32 1.0, %v564_v11  ;;  %vm585_vm3 = vmor %vm583_vm1, %vm584_vm14 }
 0x1d5   : > { %v580_v15 = vsub.f32 1.0, %v579_v12 }
 0x1d6   : > { %v566_v16 = vmul.f32 %v744_v9, %v565_v13 }
 0x1d7   : > { %v581_v19 = vmul.f32 %v746_v10, %v580_v15 }
 0x1d8   : > { %v567_v21 = vadd.f32 %v744_v9, %v566_v16 }
 0x1d9   : > { %v582_v23 = vadd.f32 %v746_v10, %v581_v19 }
 0x1da   : > { %v571_v24 = vsel %vm570_vm0, %v744_v9, %v567_v21 }
 0x1db   : > { %v576_v26 = vsel %vm573_vm2, %v575_v22, %v571_v24  ;;  %v586_v27 = vsel %vm585_vm3, %v746_v10, %v582_v23 }
 0x1dc   : > { %v593_v28 = vmul.f32 %v576_v26, %v533_v0  ;;  %v591_v29 = vsel %vm588_vm4, %v590_v25, %v586_v27 }
 0x1dd   : > { %v594_v30 = vmul.f32 %v591_v29, %v553_v1 }
 0x1de   : > { %v595_v31 = vadd.f32 %v593_v28, %v816_v3 }
 0x1df   : > { %v596_v32 = vadd.f32 %v594_v30, %v818_v4 }
 0x1e0   : > { %597 = vst [vmem:[%s224_s17] sm:$0xff] %v595_v31 }
 0x1e1   : > { %598 = vst [vmem:[%s224_s17 + $0x8] sm:$0xff] %v596_v32 }
 0x1e2 PF: > { %s15_s18 = sadd.s32 1, %s753_s18  }
 0x1e3   : > { %p12_p4 = scmp.ge.s32.totalorder %s15_s18, 4  }
 0x1e5   :  { %14 = sbr.rel (!%p12_p4) target bundleno = 1 (0x1), region = 70 }

</bundles_post_ra>
